<compile_context>
chip_gen: v5e
topology: v5e:2x2
jax: 0.10.0
libtpu: 0.0.40
codegen_flags: <defaults>
</compile_context>

<pallas_src>
import numpy as np
import jax
import jax.numpy as jnp
from jax.experimental import pallas as pl
from jax.experimental.pallas import tpu as pltpu


# ----------------------------------------------------------------------------
# Kernel A: fused patch-embed stub + L1 channel normalization
#           (torch F.normalize(feat, 1)) + text-feature matmul + logit_scale,
#           channel-major in, class-major out.
# ----------------------------------------------------------------------------
def _fused_score_kernel(scale_ref, p_ref, wp_ref, wc_ref, o_ref):
    # p_ref:  (Cp, tm)   f32  channel-major patches
    # wp_ref: (C, Cp)    bf16 patch-embed weights (transposed), for the L1 sum
    # wc_ref: (Kpad, Cp) bf16 folded patch->class weights (w_patch @ txt.T).T
    # o_ref:  (Kpad, tm) f32  class-major scaled logits
    p = p_ref[...].astype(jnp.bfloat16)
    feat_t = jnp.dot(wp_ref[...], p,
                     preferred_element_type=jnp.float32)          # (C, tm)
    # L1 over channels == sublane-direction reduce (cheap VPU adds).
    l1 = jnp.maximum(jnp.sum(jnp.abs(feat_t), axis=0, keepdims=True), 1e-12)
    logits_t = jnp.dot(wc_ref[...], p,
                       preferred_element_type=jnp.float32)        # (Kpad, tm)
    # divide after the matmul: (f/l1)@t == (f@t)/l1 ; reciprocal on the EUP
    o_ref[...] = logits_t * (scale_ref[0] * pl.reciprocal(l1, approx=True))


def fused_patch_embed_score(patches_cm, wp_t, wc_t, logit_scale, *,
                            tile_m=4096):
    """(Cp, M) patches -> (Kpad, M) scaled logits, tiled/pipelined over M."""
    Cp, M = patches_cm.shape
    C = wp_t.shape[0]
    Kpad = wc_t.shape[0]
    tm = max(128, min(tile_m, M))
    tm = (tm // 128) * 128                      # lane-aligned tiles
    grid = (pl.cdiv(M, tm),)
    scale = jnp.asarray([logit_scale], dtype=jnp.float32)
    cost = pl.CostEstimate(
        flops=2 * M * Cp * (C + Kpad),
        transcendentals=M,
        bytes_accessed=Cp * M * 4 + C * Cp * 2 + Kpad * Cp * 2 + Kpad * M * 4,
    )
    return pl.pallas_call(
        _fused_score_kernel,
        out_shape=jax.ShapeDtypeStruct((Kpad, M), jnp.float32),
        grid=grid,
        in_specs=[
            pl.BlockSpec(memory_space=pltpu.MemorySpace.SMEM),   # logit_scale
            pl.BlockSpec((Cp, tm), lambda i: (0, i)),            # patch cols
            pl.BlockSpec((C, Cp), lambda i: (0, 0)),             # resident
            pl.BlockSpec((Kpad, Cp), lambda i: (0, 0)),          # resident
        ],
        out_specs=pl.BlockSpec((Kpad, tm), lambda i: (0, i)),
        compiler_params=pltpu.CompilerParams(
            dimension_semantics=("parallel",),          # megacore split
            vmem_limit_bytes=32 * 1024 * 1024),
        cost_estimate=cost,
    )(scale, patches_cm, wp_t, wc_t)


# ----------------------------------------------------------------------------
# Kernel B: bilinear upsample (align_corners=True) of the real K classes,
#           class-major logits in, NCHW out, tiled over (batch, output rows).
# ----------------------------------------------------------------------------
def _upsample_kernel(l_ref, wh_ref, wwt_ref, o_ref):
    # l_ref: (Kpad, hf, wf) f32 class-major logits of one batch element
    # wh_ref: (th, hf) bf16, wwt_ref: (wf, W) bf16, o_ref: (K, th, W) f32
    wh = wh_ref[...]
    wwt = wwt_ref[...]
    num_classes = o_ref.shape[0]
    for k in range(num_classes):                    # static unroll, K small
        xk = l_ref[k].astype(jnp.bfloat16)                          # (hf, wf)
        t = jnp.dot(wh, xk, preferred_element_type=jnp.float32)    # (th, wf)
        o_ref[k] = jnp.dot(t.astype(jnp.bfloat16), wwt,
                           preferred_element_type=jnp.float32)     # (th, W)


def bilinear_upsample_nchw(logits_k, wh, wwt, num_classes, *, tile_h=256):
    Kpad, B, hf, wf = logits_k.shape
    H = wh.shape[0]
    W = wwt.shape[1]
    th = min(tile_h, H)
    if th % 8 != 0 or H % th != 0:
        th = H
    nh = H // th
    cost = pl.CostEstimate(
        flops=2 * B * num_classes * (H * hf * wf + H * wf * W),
        transcendentals=0,
        bytes_accessed=B * nh * Kpad * hf * wf * 4
                       + B * num_classes * H * W * 4
                       + (H * hf + wf * W) * 2,
    )
    # TODO(synk): at production hf/wf also band-slice the source rows per H
    # tile (align_corners bilinear touches a contiguous hf band) and tile/pad
    # W to a multiple of 128 so v5e stores are unmasked lane-dense vst.
    return pl.pallas_call(
        _upsample_kernel,
        out_shape=jax.ShapeDtypeStruct((B, num_classes, H, W), jnp.float32),
        grid=(B, nh),
        in_specs=[
            pl.BlockSpec((Kpad, None, hf, wf), lambda b, h: (0, b, 0, 0)),
            pl.BlockSpec((th, hf), lambda b, h: (h, 0)),
            pl.BlockSpec((wf, W), lambda b, h: (0, 0)),      # resident
        ],
        out_specs=pl.BlockSpec((None, num_classes, th, W),
                               lambda b, h: (b, 0, h, 0)),
        compiler_params=pltpu.CompilerParams(
            dimension_semantics=("parallel", "parallel")),
        cost_estimate=cost,
    )(logits_k, wh, wwt)


# ----------------------------------------------------------------------------
# Glue
# ----------------------------------------------------------------------------
def _interp_matrix(out_size, in_size):
    """Row-stochastic bilinear interpolation matrix, align_corners=True."""
    M = np.zeros((out_size, in_size), dtype=np.float32)
    if out_size == 1:
        M[0, 0] = 1.0
        return M
    scale = (in_size - 1) / (out_size - 1)
    for i in range(out_size):
        src = i * scale
        p0 = min(int(np.floor(src)), in_size - 1)
        p1 = min(p0 + 1, in_size - 1)
        w1 = src - p0
        M[i, p0] += 1.0 - w1
        M[i, p1] += w1
    return M


def trt_adapter_zs_forward(img, params, *, tile_m=4096, tile_h=256):
    B, Cin, H, W = img.shape
    hf, wf = H // 2, W // 2
    M = B * hf * wf
    K = params["num_classes"]
    Kpad = ((K + 7) // 8) * 8

    # TODO(synk): the TensorRT engine backbone is an opaque serialized binary
    # with no Pallas equivalent; replaced by a deterministic 2x2 patch-embed
    # stub producing the (B, 512, H/2, W/2)-equivalent feature map.
    # TODO(synk): this channel-major patch rearrange still round-trips HBM
    # once before Kernel A; fold it into the kernel index_map (or use
    # allow_input_fusion) at production sizes.
    patches_cm = (img.reshape(B, Cin, hf, 2, wf, 2)
                     .transpose(1, 3, 5, 0, 2, 4)
                     .reshape(Cin * 4, M))

    w_patch = params["w_patch"]                        # (Cp, C) f32
    txt = params["txt_feat"]                           # (K, C) f32, L2-normed
    Cp = w_patch.shape[0]
    wp_t = w_patch.T.astype(jnp.bfloat16)              # (C, Cp)
    # Algebraic fold (exact only because the backbone stub is linear):
    #   (feat / l1) @ txt.T == (patches @ (w_patch @ txt.T)) / l1
    w_comb = jnp.zeros((Kpad, Cp), jnp.float32).at[:K].set(txt @ w_patch.T)
    wc_t = w_comb.astype(jnp.bfloat16)                 # (Kpad, Cp)

    # Kernel A: patch-embed + L1 normalize over channels + text matmul + scale
    logits_cm = fused_patch_embed_score(
        patches_cm, wp_t, wc_t, params["logit_scale"], tile_m=tile_m)
    logits_k = logits_cm.reshape(Kpad, B, hf, wf)      # free reshape only

    # Kernel B: bilinear upsample (align_corners=True), NCHW output.
    wh = params["wh"].astype(jnp.bfloat16)             # (H, hf)
    wwt = params["wwt"].astype(jnp.bfloat16)           # (wf, W)
    return bilinear_upsample_nchw(logits_k, wh, wwt, K, tile_h=tile_h)


if __name__ == "__main__":
    key = jax.random.PRNGKey(0)
    k_img, k_patch, k_txt = jax.random.split(key, 3)

    B, Cin, H, W = 2, 3, 32, 32     # img like PyTorch NCHW input
    C, K = 512, 8                   # engine feature dim (512), #prompts

    img = jax.random.normal(k_img, (B, Cin, H, W), dtype=jnp.float32)

    # deterministic "weights" for the backbone stub
    w_patch = jax.random.normal(k_patch, (Cin * 4, C), dtype=jnp.float32) * 0.02
    # TODO(synk): CLIP encode_text has no Pallas equivalent; text features are
    # synthesized deterministically and L2-normalized as in __init__.
    tfeat = jax.random.normal(k_txt, (K, C), dtype=jnp.float32)
    txt_feat = tfeat / jnp.linalg.norm(tfeat, axis=-1, keepdims=True)

    hf, wf = H // 2, W // 2
    params = dict(
        w_patch=w_patch,
        txt_feat=txt_feat,
        num_classes=K,
        # Reference module multiplies by the raw logit_scale parameter value
        # (stored as log(1/0.07)); we do the same.
        logit_scale=float(np.log(1.0 / 0.07)),
        wh=jnp.asarray(_interp_matrix(H, hf)),          # (H, hf)
        wwt=jnp.asarray(_interp_matrix(W, wf).T),       # (wf, W)
    )

    # tile_m=128 / tile_h=16 so the toy run exercises multi-step pipelined
    # grids; production defaults are tile_m=4096, tile_h=256.
    out = trt_adapter_zs_forward(img, params, tile_m=128, tile_h=16)
    out = jax.block_until_ready(out)
    assert out.shape == (B, K, H, W), out.shape
    assert bool(jnp.all(jnp.isfinite(out)))

    # pure-JAX f32 reference of the same math (exact divide) for a parity check
    patches_ref = (img.reshape(B, Cin, hf, 2, wf, 2)
                      .transpose(0, 2, 4, 1, 3, 5)
                      .reshape(B * hf * wf, Cin * 4))
    feat = patches_ref @ w_patch
    l1 = jnp.maximum(jnp.sum(jnp.abs(feat), axis=-1, keepdims=True), 1e-12)
    ref_logits = (feat / l1) @ txt_feat.T * params["logit_scale"]
    ref_logits = ref_logits.reshape(B, hf, wf, K)
    ref = jnp.einsum("Hh,bhwk,wW->bkHW", params["wh"], ref_logits,
                     params["wwt"])
    # bf16 MXU operands + approx reciprocal + bf16 interp weights => loose tol.
    assert bool(jnp.allclose(out, ref, rtol=0.1, atol=1e-3)), \
        float(jnp.max(jnp.abs(out - ref)))

    print("KERNEL_OK")
</pallas_src>

<mosaic_0001>
module attributes {stable_mosaic.version = 11 : i64} {
  func.func @_fused_score_kernel(%arg0: i32, %arg1: memref<1xf32, #tpu.memory_space<smem>>, %arg2: memref<12x128xf32, #tpu.memory_space<vmem>>, %arg3: memref<512x12xbf16, #tpu.memory_space<vmem>>, %arg4: memref<8x12xbf16, #tpu.memory_space<vmem>>, %arg5: memref<8x128xf32, #tpu.memory_space<vmem>>) attributes {dimension_semantics = [#tpu.dimension_semantics<parallel>], iteration_bounds = array<i64: 4>, scalar_prefetch = 0 : i64, scratch_operands = 0 : i64, tpu.core_type = #tpu.core_type<tc>, window_params = [{transform_indices = @transform_0, window_bounds = array<i64: 1>}, {transform_indices = @transform_1, window_bounds = array<i64: 12, 128>}, {pipeline_mode = #tpu.pipeline_mode<synchronous>, transform_indices = @transform_2, window_bounds = array<i64: 512, 12>}, {pipeline_mode = #tpu.pipeline_mode<synchronous>, transform_indices = @transform_3, window_bounds = array<i64: 8, 12>}, {transform_indices = @transform_4, window_bounds = array<i64: 8, 128>}]} {
    %c0 = arith.constant 0 : index
    %c0_0 = arith.constant 0 : index
    %0 = vector.load %arg2[%c0, %c0_0] : memref<12x128xf32, #tpu.memory_space<vmem>>, vector<12x128xf32>
    %1 = arith.truncf %0 : vector<12x128xf32> to vector<12x128xbf16>
    %c0_1 = arith.constant 0 : index
    %c0_2 = arith.constant 0 : index
    %2 = vector.load %arg3[%c0_1, %c0_2] : memref<512x12xbf16, #tpu.memory_space<vmem>>, vector<512x12xbf16>
    %cst = arith.constant dense<0.000000e+00> : vector<512x128xf32>
    %3 = tpu.matmul %2, %1, %cst {dimension_numbers = #tpu.dot_dimension_numbers<[1], [0], [0], [1], [0, 0, 1, 1], [], []>} : vector<512x12xbf16>, vector<12x128xbf16>, vector<512x128xf32> -> vector<512x128xf32>
    %4 = math.absf %3 : vector<512x128xf32>
    %cst_3 = arith.constant dense<0.000000e+00> : vector<128xf32>
    %5 = vector.multi_reduction <add>, %4, %cst_3 [0] : vector<512x128xf32> to vector<128xf32>
    %6 = vector.shape_cast %5 : vector<128xf32> to vector<1x128xf32>
    %cst_4 = arith.constant 9.99999996E-13 : f32
    %7 = vector.broadcast %cst_4 : f32 to vector<1x128xf32>
    %8 = arith.maximumf %6, %7 : vector<1x128xf32>
    %c0_5 = arith.constant 0 : index
    %c0_6 = arith.constant 0 : index
    %9 = vector.load %arg4[%c0_5, %c0_6] : memref<8x12xbf16, #tpu.memory_space<vmem>>, vector<8x12xbf16>
    %cst_7 = arith.constant dense<0.000000e+00> : vector<8x128xf32>
    %10 = tpu.matmul %9, %1, %cst_7 {dimension_numbers = #tpu.dot_dimension_numbers<[1], [0], [0], [1], [0, 0, 1, 1], [], []>} : vector<8x12xbf16>, vector<12x128xbf16>, vector<8x128xf32> -> vector<8x128xf32>
    %c0_8 = arith.constant 0 : index
    %11 = memref.load %arg1[%c0_8] : memref<1xf32, #tpu.memory_space<smem>>
    %12 = tpu.reciprocal %8 {approx = true} : vector<1x128xf32> -> vector<1x128xf32>
    %13 = vector.broadcast %11 : f32 to vector<1x128xf32>
    %14 = arith.mulf %13, %12 : vector<1x128xf32>
    %15 = vector.broadcast %14 : vector<1x128xf32> to vector<8x128xf32>
    %16 = arith.mulf %10, %15 : vector<8x128xf32>
    %c0_9 = arith.constant 0 : index
    %c0_10 = arith.constant 0 : index
    %17 = vector.load %arg5[%c0_9, %c0_10] : memref<8x128xf32, #tpu.memory_space<vmem>>, vector<8x128xf32>
    tpu.vector_store %arg5[%c0_9, %c0_10], %16 {strides = array<i32>} : memref<8x128xf32, #tpu.memory_space<vmem>>, vector<8x128xf32>,
    return
  }
  func.func @transform_0(%arg0: i32) -> i32 {
    %c0_i32 = arith.constant 0 : i32
    %c0_i32_0 = arith.constant 0 : i32
    return %c0_i32 : i32
  }
  func.func @transform_1(%arg0: i32) -> (i32, i32) {
    %c0_i32 = arith.constant 0 : i32
    %c0_i32_0 = arith.constant 0 : i32
    return %c0_i32, %arg0 : i32, i32
  }
  func.func @transform_2(%arg0: i32) -> (i32, i32) {
    %c0_i32 = arith.constant 0 : i32
    %c0_i32_0 = arith.constant 0 : i32
    %c0_i32_1 = arith.constant 0 : i32
    return %c0_i32, %c0_i32_0 : i32, i32
  }
  func.func @transform_3(%arg0: i32) -> (i32, i32) {
    %c0_i32 = arith.constant 0 : i32
    %c0_i32_0 = arith.constant 0 : i32
    %c0_i32_1 = arith.constant 0 : i32
    return %c0_i32, %c0_i32_0 : i32, i32
  }
  func.func @transform_4(%arg0: i32) -> (i32, i32) {
    %c0_i32 = arith.constant 0 : i32
    %c0_i32_0 = arith.constant 0 : i32
    return %c0_i32, %arg0 : i32, i32
  }
}

</mosaic_0001>

<bundles_post_ra>
// kernel: tpu_custom_call.1
= control target key start
LH: loop header
LB: loop body
LE: loop exit
PB: predicated region body
PF: predicated region fallthrough
CT: control target
= control target key end

     0   :  { %s1609_s0 = inlined_call_operand.<no memory space> [shape: f32[1], index: 0, kind: input, shape index: {}]   ;;  %s1610_s1 = inlined_call_operand.vmem [shape: f32[12,512], index: 1, kind: input, shape index: {}]   ;;  %s1611_s2 = inlined_call_operand.vmem [shape: bf16[512,12], index: 2, kind: input, shape index: {}]   ;;  %s1612_s3 = inlined_call_operand.vmem [shape: bf16[8,12], index: 3, kind: input, shape index: {}]   ;;  %s1613_s4 = inlined_call_operand.hbm [shape: f32[8,512], index: 4, kind: output, shape index: {}]  }
   0x1   :  { %9 = sst [smem:[#allocation2]] %s1609_s0 }
   0x2   :  { %10 = vsyncpa [#allocation5], 0 }
   0x3   :  { %12 = vsyncpa [#allocation5 + $0x1], 0  ;;  %s1313_s17 = smov 0   ;;  %s1315_s18 = smov 0  }
   0x4   :  { %s1317_s19 = smov 0   ;;  %s1319_s20 = smov 0  }
   0x5 LB: > { %s971_s0 = sadd.s32 4294967295, %s1283_s20   ;;  %s972_s21 = sadd.s32 4294967294, %s1283_s20   ;;  %s1283_s20 = sphi %s1319_s20, %s1619_s20   ;;  %s1279_s19 = sphi %s1317_s19, %s1618_s19   ;;  %s1275_s18 = sphi %s1315_s18, %s1617_s18   ;;  %s1271_s17 = sphi %s1313_s17, %s1616_s17  }
   0x6   : > { %s1336_s22 = sadd.s32 1, %s1283_s20   ;;  %s46_s23 = sadd.s32 1, %s1279_s19 }
   0x7   : > { %s43_s24 = ssub.s32 %s1283_s20, %s1336_s22  ;;  %p53_p0 = scmp.ne.s32.totalorder %s1279_s19, %s1275_s18 }
   0x8   : > { %p44_p1 = scmp.eq.s32.totalorder %s43_s24, 0  ;;  %p54_p2 = scmp.eq.s32.totalorder %s1283_s20, 0 }
   0x9   : > { %p125_p3 = scmp.eq.s32.totalorder %s971_s0, 3  ;;  %p130_p4 = scmp.ne.s32.totalorder %s1275_s18, %s1271_s17 }
   0xa   : > { %s1349_s25 = scalar_select %p44_p1, %s1279_s19, %s46_s23  }
   0xb   : > { %p55_p5 = por %p54_p2, %p53_p0  ;;  %p1351_p6 = por %p125_p3, %p53_p0 }
   0xc   : > { %p131_p7 = scmp.eq.s32.totalorder %s972_s21, 3  ;;  %p974_p9 = scmp.ge.s32.totalorder %s1283_s20, 4 }
   0xe   : > { %p1355_p8 = por %p131_p7, %p130_p4  ;;  %156 = sbr.rel (%p974_p9) target bundleno = 25 (0x19), region = 28 }
  0x13   : > { %159 = sbr.rel (!%p55_p5) target bundleno = 25 (0x19), region = 32  ;;  %s161_s28 = sand.u32 (%p55_p5), 1, %s1279_s19  }
  0x14   : > { %s976_s29 = sshll.u32 (%p55_p5), %s1283_s20, 3  ;;  %s975_s30 = sshll.u32 (%p55_p5), %s161_s28, 4 }
  0x15   : > { %s165_s7 = scalar_lea.vmem (%p55_p5), %s1610_s1, %s976_s29  ;;  %s163_s8 = scalar_lea.vmem (%p55_p5), [#allocation3], %s975_s30 }
  0x16   : > { %v196_v0 = vld [vmem:[%s165_s7] sm:$0xff] (%p55_p5) }
  0x17   : > { %v198_v1 = vld [vmem:[%s165_s7 + $0x20] sm:$0xff] (%p55_p5)  ;;  %197 = vst [vmem:[%s163_s8] sm:$0xff] (%p55_p5), %v196_v0 }
  0x18   : > { %199 = vst [vmem:[%s163_s8 + $0x8] sm:$0xff] %v198_v1 }
  0x19 PF: > { %p977_p10 = scmp.ge.s32.totalorder %s1283_s20, 1  ;;  %p204_p11 = scmp.lt.s32.totalorder %s1283_s20, 5 }
  0x1b   : > { %p205_p12 = pnand %p977_p10, %p204_p11 }
  0x1c   : > { %s1368_s9 = sand.u32 (!%p205_p12), 1, %s1275_s18   ;;  %s1142_s12 = sshll.u32 (!%p205_p12), %s971_s0, 3 }
  0x1d   : > { %208 = sbr.rel (%p205_p12) target bundleno = 427 (0x1ab), region = 70  ;;  %s978_s10 = sshll.u32 (!%p205_p12), %s1368_s9, 4 }
  0x1e   : > { %s213_s11 = scalar_lea.vmem (!%p205_p12), [#allocation3], %s978_s10  ;;  %s885_s10 = sld [smem:[#allocation2]] (!%p205_p12) }
  0x1f   : > { %s902_s15 = scalar_lea.hbm (!%p205_p12), %s1613_s4, %s1142_s12  ;;  %s892_s24 = scalar_lea.sflag (!%p205_p12), [#allocation5], %s1368_s9 }
  0x20   : > { %s906_s23 = sshll.u32 (!%p205_p12), %s902_s15, 4  ;;  %s1241_s5 = scalar_lea.hbm (!%p205_p12), %s1613_s4, 32  ;;  %s907_s23 = int_to_ptr.hbm [resolvable:$true] %s906_s23 }
  0x21   : > { %s1235_s28 = sshra.s32 (!%p205_p12), %s907_s23, 4  ;;  %s1236_s28 = int_to_ptr.hbm [resolvable:$true] %s1235_s28 }
  0x22   : > { %v237_v2 = vld [vmem:[%s213_s11] sm:$0xff]  ;;  %v238_v3 = vld [vmem:[%s213_s11 + $0x8] sm:$0xf]  ;;  %vm561_vm0 = vcmask 1045504   ;;  %vm464_vm1 = vcmask 97280   ;;  %s979_s11 = sshll.u32 %s1368_s9, 3  ;;  %p1242_p2 = scmp.lt.s32.totalorder %s1236_s28, %s1613_s4 }
  0x23   : > { %v239_v4 = vpack.c.bf16 %v238_v3, %v237_v2  ;;  %v1145_v6 = vld [vmem:[%s1611_s2] sm:$0xff]  ;;  %v1159_v7 = vld [vmem:[%s1611_s2 + $0x70] sm:$0xff]  ;;  %v1146_v8 = vld [vmem:[%s1611_s2 + $0x8] sm:$0xff]  ;;  %s235_s16 = scalar_lea.vmem [#allocation4], %s979_s11  ;;  %s1237_s29 = scalar_lea.hbm %s1236_s28, 8 }
  0x24   : > { %v1160_v9 = vld [vmem:[%s1611_s2 + $0x78] sm:$0xff]  ;;  %v1147_v10 = vld [vmem:[%s1611_s2 + $0x10] sm:$0xff]  ;;  %v1161_v11 = vld [vmem:[%s1611_s2 + $0x80] sm:$0xff]  ;;  %s904_s21 = sshll.u32 %s235_s16, 4  ;;  %p1238_p13 = scmp.ne.s32.totalorder %s1236_s28, %s1237_s29  ;;  %s905_s21 = int_to_ptr.vmem [resolvable:$true] %s904_s21 }
  0x25   : > { %v563_v5 = vsel %vm561_vm0, %v239_v4, 0  ;;  %v1154_v12 = vld [vmem:[%s1611_s2 + $0x48] sm:$0xff]  ;;  %v1168_v13 = vld [vmem:[%s1611_s2 + $0xb8] sm:$0xff]  ;;  %v1155_v16 = vld [vmem:[%s1611_s2 + $0x50] sm:$0xff]  ;;  %p1243_p3 = scmp.lt.s32.totalorder %s1241_s5, %s1237_s29 }
  0x26   : > { %572 = vmatpush.bf16.msra.mxu0 %v563_v5  ;;  %1178 = vmatpush.bf16.msra.mxu2 %v563_v5  ;;  %v1148_v14 = vld [vmem:[%s1611_s2 + $0x18] sm:$0xff]  ;;  %v1162_v15 = vld [vmem:[%s1611_s2 + $0x88] sm:$0xff]  ;;  %v1169_v17 = vld [vmem:[%s1611_s2 + $0xc0] sm:$0xff]  ;;  %p1239_p0 = pnand %p1238_p13, %p1351_p6 }
  0x27   : > { %1177 = vmatpush.bf16.msra.mxu1 %v563_v5  ;;  %1179 = vmatpush.bf16.msra.mxu3 %v563_v5  ;;  %v1149_v18 = vld [vmem:[%s1611_s2 + $0x20] sm:$0xff]  ;;  %v1163_v19 = vld [vmem:[%s1611_s2 + $0x90] sm:$0xff]  ;;  %v1156_v20 = vld [vmem:[%s1611_s2 + $0x58] sm:$0xff]  ;;  %p1244_p4 = por %p1243_p3, %p1242_p2 }
  0x28   : > { %v1170_v21 = vld [vmem:[%s1611_s2 + $0xc8] sm:$0xff]  ;;  %v1164_v23 = vld [vmem:[%s1611_s2 + $0x98] sm:$0xff]  ;;  %v1157_v24 = vld [vmem:[%s1611_s2 + $0x60] sm:$0xff]  ;;  %p1240_p1 = pneg %p1239_p0 }
  0x29   : > { %1108 = vmatmul.msk.bf16.vlgmr.msra.gmra.mxu0 %vm464_vm1, %v1145_v6  ;;  %1122 = vmatmul.msk.bf16.vlgmr.msra.gmra.mxu2 %vm464_vm1, %v1159_v7  ;;  %v1150_v22 = vld [vmem:[%s1611_s2 + $0x28] sm:$0xff]  ;;  %v1151_v25 = vld [vmem:[%s1611_s2 + $0x30] sm:$0xff]  ;;  %v1165_v27 = vld [vmem:[%s1611_s2 + $0xa0] sm:$0xff] }
  0x2a   : > { %1117 = vmatmul.msk.bf16.vlgmr.msra.gmra.mxu1 %vm464_vm1, %v1154_v12  ;;  %1131 = vmatmul.msk.bf16.vlgmr.msra.gmra.mxu3 %vm464_vm1, %v1168_v13  ;;  %v1171_v26 = vld [vmem:[%s1611_s2 + $0xd0] sm:$0xff]  ;;  %v1158_v28 = vld [vmem:[%s1611_s2 + $0x68] sm:$0xff]  ;;  %v1152_v29 = vld [vmem:[%s1611_s2 + $0x38] sm:$0xff]  ;;  %p1245_p5 = pnand %p1244_p4, %p1240_p1 }
  0x2b   : > { %879 = vmatpush.bf16.msrb.mxu1 %v563_v5  ;;  %v1172_v30 = vld [vmem:[%s1611_s2 + $0xd8] sm:$0xff]  ;;  %v1166_v31 = vld [vmem:[%s1611_s2 + $0xa8] sm:$0xff]  ;;  %v1153_v32 = vld [vmem:[%s1611_s2 + $0x40] sm:$0xff] }
  0x2c   : > { %v1173_v33 = vld [vmem:[%s1611_s2 + $0xe0] sm:$0xff]  ;;  %v1167_v39 = vld [vmem:[%s1611_s2 + $0xb0] sm:$0xff]  ;;  %v1174_v40 = vld [vmem:[%s1611_s2 + $0xe8] sm:$0xff] }
  0x2d   : > { %v1175_v49 = vld [vmem:[%s1611_s2 + $0xf0] sm:$0xff]  ;;  %v1176_v57 = vld [vmem:[%s1611_s2 + $0xf8] sm:$0xff] }
  0x39   : > { %1109 = vmatmul.msk.bf16.gmra.mxu0 %vm464_vm1, %v1146_v8  ;;  %1123 = vmatmul.msk.bf16.gmra.mxu2 %vm464_vm1, %v1160_v9 }
  0x3a   : > { %1118 = vmatmul.msk.bf16.gmra.mxu1 %vm464_vm1, %v1155_v16  ;;  %1132 = vmatmul.msk.bf16.gmra.mxu3 %vm464_vm1, %v1169_v17 }
  0x49   : > { %1110 = vmatmul.msk.bf16.gmra.mxu0 %vm464_vm1, %v1147_v10  ;;  %1124 = vmatmul.msk.bf16.gmra.mxu2 %vm464_vm1, %v1161_v11  ;;  %v868_v10 = vld [vmem:[%s1612_s3] sm:$0xf] }
  0x4a   : > { %1119 = vmatmul.msk.bf16.gmra.mxu1 %vm464_vm1, %v1156_v20  ;;  %1133 = vmatmul.msk.bf16.gmra.mxu3 %vm464_vm1, %v1170_v21 }
  0x59   : > { %1111 = vmatmul.msk.bf16.gmra.mxu0 %vm464_vm1, %v1148_v14  ;;  %1125 = vmatmul.msk.bf16.gmra.mxu2 %vm464_vm1, %v1162_v15 }
  0x5a   : > { %1120 = vmatmul.msk.bf16.gmra.mxu1 %vm464_vm1, %v1157_v24  ;;  %1134 = vmatmul.msk.bf16.gmra.mxu3 %vm464_vm1, %v1171_v26 }
  0x69   : > { %1112 = vmatmul.msk.bf16.gmra.mxu0 %vm464_vm1, %v1149_v18  ;;  %1126 = vmatmul.msk.bf16.gmra.mxu2 %vm464_vm1, %v1163_v19 }
  0x6a   : > { %1121 = vmatmul.msk.bf16.gmra.mxu1 %vm464_vm1, %v1158_v28  ;;  %1135 = vmatmul.msk.bf16.gmra.mxu3 %vm464_vm1, %v1172_v30 }
  0x79   : > { %1113 = vmatmul.msk.bf16.gmra.mxu0 %vm464_vm1, %v1150_v22  ;;  %1127 = vmatmul.msk.bf16.gmra.mxu2 %vm464_vm1, %v1164_v23 }
  0x7a   : > { %1136 = vmatmul.msk.bf16.gmra.mxu3 %vm464_vm1, %v1173_v33  ;;  %1140 = vmatmul.msk.bf16.vlgmr.msrb.gmra.mxu1 %vm464_vm1, %v868_v10 }
  0x89   : > { %1114 = vmatmul.msk.bf16.gmra.mxu0 %vm464_vm1, %v1151_v25  ;;  %1128 = vmatmul.msk.bf16.gmra.mxu2 %vm464_vm1, %v1165_v27 }
  0x8a   : > { %1137 = vmatmul.msk.bf16.gmra.mxu3 %vm464_vm1, %v1174_v40 }
  0x99   : > { %1115 = vmatmul.msk.bf16.gmra.mxu0 %vm464_vm1, %v1152_v29  ;;  %1129 = vmatmul.msk.bf16.gmra.mxu2 %vm464_vm1, %v1166_v31 }
  0x9a   : > { %1138 = vmatmul.msk.bf16.gmra.mxu3 %vm464_vm1, %v1175_v49 }
  0xa6   : > { %v574_v34 = vpop.f32.mrf.mxu0 }
  0xa7   : > { %v734_v36 = vand.u32 2147483647, %v574_v34  ;;  %v619_v2 = vpop.f32.mrf.mxu1 }
  0xa9   : > { %1116 = vmatmul.msk.bf16.gmra.mxu0 %vm464_vm1, %v1153_v32  ;;  %1130 = vmatmul.msk.bf16.gmra.mxu2 %vm464_vm1, %v1167_v39 }
  0xaa   : > { %1139 = vmatmul.msk.bf16.gmra.mxu3 %vm464_vm1, %v1176_v57 }
  0xac   : > { %v1491_v44 = vpop.f32.mrf.mxu2 }
  0xad   : > { %v1507_v63 = vpop.f32.mrf.mxu3 }
  0xae   : > { %v576_v35 = vpop.f32.mrf.mxu0 }
  0xaf   : > { %v735_v37 = vand.u32 2147483647, %v576_v35  ;;  %v621_v6 = vpop.f32.mrf.mxu1 }
  0xb1   : > { %v798_v38 = vadd.f32 %v735_v37, %v734_v36 }
  0xb4   : > { %v1493_v48 = vpop.f32.mrf.mxu2 }
  0xb5   : > { %v1511_v3 = vpop.f32.mrf.mxu3 }
  0xb6   : > { %v579_v41 = vpop.f32.mrf.mxu0 }
  0xb7   : > { %v736_v42 = vand.u32 2147483647, %v579_v41  ;;  %v624_v11 = vpop.f32.mrf.mxu1 }
  0xb9   : > { %v799_v43 = vadd.f32 %v798_v38, %v736_v42 }
  0xbc   : > { %v1499_v54 = vpop.f32.mrf.mxu2 }
  0xbd   : > { %v1515_v7 = vpop.f32.mrf.mxu3 }
  0xbe   : > { %v581_v45 = vpop.f32.mrf.mxu0 }
  0xbf   : > { %v737_v46 = vand.u32 2147483647, %v581_v45  ;;  %v626_v15 = vpop.f32.mrf.mxu1 }
  0xc1   : > { %v800_v47 = vadd.f32 %v799_v43, %v737_v46 }
  0xc4   : > { %v1505_v60 = vpop.f32.mrf.mxu2 }
  0xc5   : > { %v1523_v12 = vpop.f32.mrf.mxu3 }
  0xc6   : > { %v584_v50 = vpop.f32.mrf.mxu0 }
  0xc7   : > { %v738_v51 = vand.u32 2147483647, %v584_v50  ;;  %v629_v20 = vpop.f32.mrf.mxu1 }
  0xc9   : > { %v801_v52 = vadd.f32 %v800_v47, %v738_v51 }
  0xcc   : > { %v1509_v0 = vpop.f32.mrf.mxu2 }
  0xcd   : > { %v1527_v17 = vpop.f32.mrf.mxu3 }
  0xce   : > { %v586_v53 = vpop.f32.mrf.mxu0 }
  0xcf   : > { %v739_v55 = vand.u32 2147483647, %v586_v53  ;;  %v631_v24 = vpop.f32.mrf.mxu1 }
  0xd1   : > { %v802_v56 = vadd.f32 %v801_v52, %v739_v55 }
  0xd4   : > { %v1513_v4 = vpop.f32.mrf.mxu2 }
  0xd5   : > { %v1531_v21 = vpop.f32.mrf.mxu3 }
  0xd6   : > { %v589_v58 = vpop.f32.mrf.mxu0 }
  0xd7   : > { %v740_v59 = vand.u32 2147483647, %v589_v58  ;;  %v634_v36 = vpop.f32.mrf.mxu1 }
  0xd9   : > { %v803_v61 = vadd.f32 %v802_v56, %v740_v59  ;;  %v752_v59 = vand.u32 2147483647, %v619_v2 }
  0xdc   : > { %v1517_v9 = vpop.f32.mrf.mxu2 }
  0xdd   : > { %v1535_v26 = vpop.f32.mrf.mxu3 }
  0xde   : > { %v591_v62 = vpop.f32.mrf.mxu0 }
  0xdf   : > { %v741_v25 = vand.u32 2147483647, %v591_v62  ;;  %v636_v52 = vpop.f32.mrf.mxu1 }
  0xe1   : > { %v804_v28 = vadd.f32 %v803_v61, %v741_v25  ;;  %v756_v25 = vand.u32 2147483647, %v629_v20  ;;  %v763_v20 = vand.u32 2147483647, %v1493_v48 }
  0xe4   : > { %v1525_v14 = vpop.f32.mrf.mxu2 }
  0xe5   : > { %v1539_v39 = vpop.f32.mrf.mxu3  ;;  %v769_v48 = vand.u32 2147483647, %v1525_v14 }
  0xe6   : > { %v594_v1 = vpop.f32.mrf.mxu0 }
  0xe7   : > { %v742_v27 = vand.u32 2147483647, %v594_v1  ;;  %v753_v1 = vand.u32 2147483647, %v621_v6 }
  0xe9   : > { %v805_v32 = vadd.f32 %v804_v28, %v742_v27  ;;  %v757_v28 = vand.u32 2147483647, %v631_v24 }
  0xec   : > { %v1529_v18 = vpop.f32.mrf.mxu2 }
  0xed   : > { %v1543_v56 = vpop.f32.mrf.mxu3 }
  0xee   : > { %v596_v5 = vpop.f32.mrf.mxu0 }
  0xef   : > { %v743_v29 = vand.u32 2147483647, %v596_v5 }
  0xf1   : > { %v806_v34 = vadd.f32 %v805_v32, %v743_v29  ;;  %v758_v32 = vand.u32 2147483647, %v634_v36 }
  0xf4   : > { %v1533_v22 = vpop.f32.mrf.mxu2 }
  0xf6   : > { %v599_v8 = vpop.f32.mrf.mxu0 }
  0xf7   : > { %v744_v33 = vand.u32 2147483647, %v599_v8  ;;  %v754_v8 = vand.u32 2147483647, %v624_v11 }
  0xf9   : > { %v807_v37 = vadd.f32 %v806_v34, %v744_v33  ;;  %v759_v34 = vand.u32 2147483647, %v636_v52  ;;  %v767_v52 = vand.u32 2147483647, %v1513_v4 }
  0xfc   : > { %v1537_v31 = vpop.f32.mrf.mxu2 }
  0xfe   : > { %v601_v13 = vpop.f32.mrf.mxu0 }
  0xff   : > { %v745_v35 = vand.u32 2147483647, %v601_v13  ;;  %v639_v13 = vpop.f32.mrf.mxu1 }
 0x101   : > { %v808_v40 = vadd.f32 %v807_v37, %v745_v35  ;;  %v760_v37 = vand.u32 2147483647, %v639_v13 }
 0x104   : > { %v1541_v46 = vpop.f32.mrf.mxu2 }
 0x105   : > { %v773_v4 = vand.u32 2147483647, %v1541_v46  ;;  %v781_v46 = vand.u32 2147483647, %v1511_v3 }
 0x106   : > { %v604_v16 = vpop.f32.mrf.mxu0 }
 0x107   : > { %v746_v38 = vand.u32 2147483647, %v604_v16  ;;  %v755_v16 = vand.u32 2147483647, %v626_v15  ;;  %v641_v35 = vpop.f32.mrf.mxu1  ;;  %v762_v15 = vand.u32 2147483647, %v1491_v44 }
 0x109   : > { %v809_v43 = vadd.f32 %v808_v40, %v746_v38  ;;  %v761_v40 = vand.u32 2147483647, %v641_v35 }
 0x10c   : > { %v674_v62 = vpop.f32.mrf.mxu2 }
 0x10d   : > { %v774_v13 = vand.u32 2147483647, %v674_v62 }
 0x10e   : > { %v606_v19 = vpop.f32.mrf.mxu0 }
 0x10f   : > { %v747_v41 = vand.u32 2147483647, %v606_v19 }
 0x111   : > { %v810_v47 = vadd.f32 %v809_v43, %v747_v41  ;;  %v764_v43 = vand.u32 2147483647, %v1499_v54  ;;  %v770_v54 = vand.u32 2147483647, %v1529_v18 }
 0x116   : > { %v609_v23 = vpop.f32.mrf.mxu0 }
 0x117   : > { %v748_v45 = vand.u32 2147483647, %v609_v23  ;;  %v1545_v23 = vpop.f32.mrf.mxu3 }
 0x119   : > { %v811_v50 = vadd.f32 %v810_v47, %v748_v45  ;;  %v765_v45 = vand.u32 2147483647, %v1505_v60 }
 0x11e   : > { %v611_v30 = vpop.f32.mrf.mxu0 }
 0x11f   : > { %v749_v49 = vand.u32 2147483647, %v611_v30  ;;  %v676_v30 = vpop.f32.mrf.mxu2  ;;  %v1547_v38 = vpop.f32.mrf.mxu3 }
 0x121   : > { %v812_v53 = vadd.f32 %v811_v50, %v749_v49  ;;  %v766_v50 = vand.u32 2147483647, %v1509_v0  ;;  %v772_v0 = vand.u32 2147483647, %v1537_v31  ;;  %v780_v31 = vand.u32 2147483647, %v1507_v63 }
 0x122   : > { %v786_v63 = vand.u32 2147483647, %v1535_v26 }
 0x126   : > { %v614_v42 = vpop.f32.mrf.mxu0 }
 0x127   : > { %v750_v51 = vand.u32 2147483647, %v614_v42  ;;  %v679_v42 = vpop.f32.mrf.mxu2  ;;  %v1553_v49 = vpop.f32.mrf.mxu3 }
 0x129   : > { %v813_v57 = vadd.f32 %v812_v53, %v750_v51 }
 0x12e   : > { %v616_v55 = vpop.f32.mrf.mxu0 }
 0x12f   : > { %v751_v58 = vand.u32 2147483647, %v616_v55  ;;  %v681_v44 = vpop.f32.mrf.mxu2  ;;  %v768_v55 = vand.u32 2147483647, %v1517_v9  ;;  %v719_v60 = vpop.f32.mrf.mxu3 }
 0x131   : > { %v814_v61 = vadd.f32 %v813_v57, %v751_v58 }
 0x133   : > { %v815_v5 = vadd.f32 %v814_v61, %v752_v59  ;;  %v771_v61 = vand.u32 2147483647, %v1533_v22 }
 0x135   : > { %v816_v10 = vadd.f32 %v815_v5, %v753_v1 }
 0x137   : > { %v817_v19 = vadd.f32 %v816_v10, %v754_v8  ;;  %v684_v8 = vpop.f32.mrf.mxu2  ;;  %v721_v14 = vpop.f32.mrf.mxu3 }
 0x138   : > { %v778_v22 = vand.u32 2147483647, %v684_v8 }
 0x139   : > { %v818_v27 = vadd.f32 %v817_v19, %v755_v16  ;;  %v775_v16 = vand.u32 2147483647, %v676_v30  ;;  %v782_v30 = vand.u32 2147483647, %v1515_v7 }
 0x13b   : > { %v819_v29 = vadd.f32 %v818_v27, %v756_v25  ;;  %v776_v27 = vand.u32 2147483647, %v679_v42 }
 0x13d   : > { %v820_v33 = vadd.f32 %v819_v29, %v757_v28  ;;  %v777_v28 = vand.u32 2147483647, %v681_v44 }
 0x13f   : > { %v821_v2 = vadd.f32 %v820_v33, %v758_v32  ;;  %v686_v29 = vpop.f32.mrf.mxu2  ;;  %v724_v35 = vpop.f32.mrf.mxu3 }
 0x141   : > { %v822_v6 = vadd.f32 %v821_v2, %v759_v34  ;;  %v779_v34 = vand.u32 2147483647, %v686_v29 }
 0x143   : > { %v823_v11 = vadd.f32 %v822_v6, %v760_v37  ;;  %v783_v6 = vand.u32 2147483647, %v1523_v12  ;;  %v789_v12 = vand.u32 2147483647, %v1545_v23 }
 0x145   : > { %v824_v41 = vadd.f32 %v823_v11, %v761_v40  ;;  %v784_v40 = vand.u32 2147483647, %v1527_v17  ;;  %v790_v17 = vand.u32 2147483647, %v1547_v38 }
 0x147   : > { %v825_v24 = vadd.f32 %v824_v41, %v762_v15  ;;  %v785_v41 = vand.u32 2147483647, %v1531_v21  ;;  %v791_v21 = vand.u32 2147483647, %v1553_v49 }
 0x149   : > { %v826_v36 = vadd.f32 %v825_v24, %v763_v20  ;;  %v726_v20 = vpop.f32.mrf.mxu3 }
 0x14b   : > { %v827_v47 = vadd.f32 %v826_v36, %v764_v43  ;;  %v787_v43 = vand.u32 2147483647, %v1539_v39  ;;  %v788_v36 = vand.u32 2147483647, %v1543_v56 }
 0x14d   : > { %v828_v51 = vadd.f32 %v827_v47, %v765_v45  ;;  %v881_v45 = vpop.f32.mrf.mxu1 }
 0x14f   : > { %v829_v53 = vadd.f32 %v828_v51, %v766_v50 }
 0x151   : > { %v830_v57 = vadd.f32 %v829_v53, %v767_v52  ;;  %v729_v51 = vpop.f32.mrf.mxu3  ;;  %v792_v53 = vand.u32 2147483647, %v719_v60 }
 0x153   : > { %v831_v58 = vadd.f32 %v830_v57, %v768_v55  ;;  %v793_v55 = vand.u32 2147483647, %v721_v14 }
 0x155   : > { %v832_v59 = vadd.f32 %v831_v58, %v769_v48  ;;  %v883_v44 = vpop.f32.mrf.mxu1  ;;  %v794_v48 = vand.u32 2147483647, %v724_v35  ;;  %v795_v58 = vand.u32 2147483647, %v726_v20 }
 0x157   : > { %v833_v1 = vadd.f32 %v832_v59, %v770_v54  ;;  %v796_v59 = vand.u32 2147483647, %v729_v51 }
 0x159   : > { %v834_v5 = vadd.f32 %v833_v1, %v771_v61  ;;  %v731_v54 = vpop.f32.mrf.mxu3 }
 0x15a   : > { %v797_v61 = vand.u32 2147483647, %v731_v54 }
 0x15b   : > { %v835_v10 = vadd.f32 %v834_v5, %v772_v0 }
 0x15d   : > { %v836_v9 = vadd.f32 %v835_v10, %v773_v4 }
 0x15f   : > { %v837_v19 = vadd.f32 %v836_v9, %v774_v13  ;;  %v887_v13 = vstv %s885_s10 }
 0x161   : > { %v838_v25 = vadd.f32 %v837_v19, %v775_v16 }
 0x163   : > { %v839_v18 = vadd.f32 %v838_v25, %v776_v27 }
 0x165   : > { %v840_v32 = vadd.f32 %v839_v18, %v777_v28 }
 0x167   : > { %v841_v33 = vadd.f32 %v840_v32, %v778_v22 }
 0x169   : > { %v842_v2 = vadd.f32 %v841_v33, %v779_v34 }
 0x16b   : > { %v843_v62 = vadd.f32 %v842_v2, %v780_v31 }
 0x16d   : > { %v844_v37 = vadd.f32 %v843_v62, %v781_v46 }
 0x16f   : > { %v845_v11 = vadd.f32 %v844_v37, %v782_v30 }
 0x171   : > { %v846_v15 = vadd.f32 %v845_v11, %v783_v6 }
 0x173   : > { %v847_v42 = vadd.f32 %v846_v15, %v784_v40 }
 0x175   : > { %v848_v24 = vadd.f32 %v847_v42, %v785_v41 }
 0x177   : > { %v849_v3 = vadd.f32 %v848_v24, %v786_v63 }
 0x179   : > { %v850_v7 = vadd.f32 %v849_v3, %v787_v43 }
 0x17b   : > { %v851_v47 = vadd.f32 %v850_v7, %v788_v36 }
 0x17d   : > { %v852_v50 = vadd.f32 %v851_v47, %v789_v12 }
 0x17f   : > { %v853_v52 = vadd.f32 %v852_v50, %v790_v17 }
 0x181   : > { %v854_v26 = vadd.f32 %v853_v52, %v791_v21 }
 0x183   : > { %v855_v39 = vadd.f32 %v854_v26, %v792_v53 }
 0x185   : > { %v856_v57 = vadd.f32 %v855_v39, %v793_v55 }
 0x187   : > { %v857_v56 = vadd.f32 %v856_v57, %v794_v48 }
 0x189   : > { %v858_v23 = vadd.f32 %v857_v56, %v795_v58 }
 0x18b   : > { %v859_v38 = vadd.f32 %v858_v23, %v796_v59 }
 0x18d   : > { %v860_v1 = vadd.f32 %v859_v38, %v797_v61 }
 0x18f   : > { %v861_v0 = vrot.slane %v860_v1, 4 }
 0x191   : > { %v862_v49 = vadd.f32 %v861_v0, %v860_v1 }
 0x193   : > { %v863_v5 = vrot.slane %v862_v49, 2 }
 0x195   : > { %v864_v60 = vadd.f32 %v863_v5, %v862_v49 }
 0x197   : > { %v865_v8 = vrot.slane %v864_v60, 1 }
 0x199   : > { %v866_v4 = vadd.f32 %v865_v8, %v864_v60 }
 0x19b   : > { %v867_v10 = vmax.f32 %v866_v4, 1e-12 }
 0x19d   : > { %1219 = vrcp.f32 %v867_v10 }
 0x1a3   : > { %v1220_v9 = vpop.eup %1219 }
 0x1a4   : > { %v888_v16 = vmul.f32 %v1220_v9, %v887_v13 }
 0x1a6   : > { %v889_v19 = vmul.f32 %v888_v16, %v881_v45 }
 0x1a8   : > { %890 = vst [vmem:[%s235_s16] sm:$0xff] %v889_v19 }
 0x1a9   : > { %1248 = shalt.err (!%p1245_p5)
}
 0x1aa   : > { %1180 = dma.vmem_to_hbm [thread:$0]  (%p1351_p6), %s905_s21, 128, %s907_s23, %s892_s24  }
 0x1ab PF: > { %p1186_p7 = scmp.ge.s32.totalorder %s1283_s20, 2  ;;  %s918_s9 = sand.u32 1, %s1271_s17  }
 0x1ac   : > { %s919_s8 = scalar_lea.sflag [#allocation5], %s918_s9 }
 0x1ad   : > { %p1183_p9 = pnand %p1186_p7, %p1355_p8 }
 0x1af   : > { %p1184_p10 = pneg %p1183_p9 }
 0x1b1   : > { %1266 = dma.done.wait (%p1184_p10), %s919_s8, 128  }
 0x1b2   : > { %1268 = vsyncadd (%p1184_p10), %s919_s8, 4294967168  ;;  %p15_p11 = scmp.ge.s32.totalorder %s1336_s22, 6   ;;  %s1616_s17 = smov %s1275_s18 }
 0x1b3   : > { %s1617_s18 = smov %s1279_s19  ;;  %s1618_s19 = smov %s1349_s25 }
 0x1b4   : > { %s1619_s20 = smov %s1336_s22  ;;  %17 = sbr.rel (!%p15_p11) target bundleno = 5 (0x5), region = 114 }
 0x1b9   :  { %925 = vsyncpa [#allocation5], 1 }
 0x1ba   :  { %927 = vsyncpa [#allocation5 + $0x1], 1 }

</bundles_post_ra>
